<compile_context>
chip_gen: v5e
topology: v5e:2x2
jax: 0.10.0
libtpu: 0.0.40
codegen_flags: <defaults>
</compile_context>

<pallas_src>
import jax
import jax.numpy as jnp
from jax.experimental import pallas as pl
from jax.experimental.pallas import tpu as pltpu


def pam_kernel(q_ref, k_ref, v_ref, out_ref, m_ref):
    # q_ref: (C, TP)   k_ref: (C, K, TP)   v_ref: (C, K, TP)
    # out_ref: (C, TP) m_ref: (K, TP)
    C = q_ref.shape[0]

    q = q_ref[...].astype(jnp.float32)                          # (C, TP)

    # score[k, p] = sum_c Key[c, k, p] * Q[c, p]
    # Unrolled over C: each step is a contiguous (K, TP) slab load + fma;
    # no (C, K, TP) broadcast temporary is materialized.
    score = k_ref[0].astype(jnp.float32) * q[0:1, :]            # (K, TP)
    for c in range(1, C):
        score = score + k_ref[c].astype(jnp.float32) * q[c:c + 1, :]

    # Numerically stable, EXACT softmax over the K (sublane) axis.
    score = score - jnp.max(score, axis=0, keepdims=True)
    e = jnp.exp(score)                                          # (K, TP)
    denom = jnp.sum(e, axis=0, keepdims=True)                   # (1, TP)
    m = e / denom                                               # (K, TP) exact
    m_ref[...] = m.astype(m_ref.dtype)

    # out[c, p] = sum_k m[k, p] * Value[c, k, p]
    # Value stays in the same (C, K, TP) layout as Key: per-channel multiply
    # + sublane (XLU) reduce; the XLU slot has slack here.
    rows = []
    for c in range(C):
        rows.append(jnp.sum(m * v_ref[c].astype(jnp.float32),
                            axis=0, keepdims=True))             # (1, TP)
    out_ref[...] = jnp.concatenate(rows, axis=0).astype(out_ref.dtype)


def _vmem_capacity_bytes():
    """Per-core VMEM capacity; conservative 64 MiB (v7x) fallback."""
    try:
        cap = int(pltpu.get_tpu_info().vmem_capacity_bytes)
        if cap > 0:
            return cap
    except Exception:
        pass
    return 64 * 1024 * 1024


def _choose_tile_p(P, B, K, C, itemsize, max_tile_p=4096):
    """Largest 128-multiple tile of P that divides P and fits the VMEM budget.

    Returns (tile_p, vmem_limit_bytes). Budget is generation-aware
    (128 MiB on v5e/v6e, 64 MiB per TC on v7x)."""
    vmem_cap = _vmem_capacity_bytes()
    vmem_limit = int(vmem_cap * 0.9)
    budget = int(vmem_cap * 0.7)

    bytes_per_pixel = (2 * (C + 2 * C * K) * itemsize   # double-buffered inputs
                       + 2 * (C * itemsize + 4 * K)     # double-buffered outputs
                       + (2 * C + 3 * K) * 4)           # in-kernel f32 working set

    if P % 128 != 0:
        # Full-extent block escape hatch; guard against silently blowing VMEM.
        if P * bytes_per_pixel > budget:
            raise ValueError(
                f"P={P} is not a multiple of 128 and too large to process untiled; "
                "pad h*w to a multiple of 128.")
        return P, vmem_limit

    cap_tp = max(128, (budget // bytes_per_pixel) // 128 * 128)
    tp = min(P, max_tile_p, cap_tp)
    if B == 1 and P >= 256:
        # Keep at least 2 parallel grid steps so v7x's second TensorCore has work.
        tp = min(tp, max(128, (P // 2) // 128 * 128))
    tp = max(128, (tp // 128) * 128)
    while P % tp:
        tp -= 128
    return tp, vmem_limit


def pam_attention(q, key, val):
    """q: (B, C, P); key, val: (B, C, K, P)
       -> out (B, C, P) in q.dtype, m (B, K, P) in float32."""
    B, C, P = q.shape
    K = key.shape[2]
    itemsize = jnp.dtype(q.dtype).itemsize
    TP, vmem_limit = _choose_tile_p(P, B, K, C, itemsize)
    grid = (B, P // TP)

    cost = pl.CostEstimate(
        flops=int(B * P * (4 * C * K + 4 * K)),
        transcendentals=int(B * P * (K + 1)),
        bytes_accessed=int((q.size + key.size + val.size + B * C * P) * itemsize
                           + B * K * P * 4),
    )

    out, m = pl.pallas_call(
        pam_kernel,
        out_shape=(
            jax.ShapeDtypeStruct((B, C, P), q.dtype),
            jax.ShapeDtypeStruct((B, K, P), jnp.float32),
        ),
        grid=grid,
        in_specs=[
            pl.BlockSpec((None, C, TP), lambda b, p: (b, 0, p)),
            pl.BlockSpec((None, C, K, TP), lambda b, p: (b, 0, 0, p)),
            pl.BlockSpec((None, C, K, TP), lambda b, p: (b, 0, 0, p)),
        ],
        out_specs=(
            pl.BlockSpec((None, C, TP), lambda b, p: (b, 0, p)),
            pl.BlockSpec((None, K, TP), lambda b, p: (b, 0, p)),
        ),
        compiler_params=pltpu.CompilerParams(
            dimension_semantics=("parallel", "parallel"),
            vmem_limit_bytes=vmem_limit,
        ),
        cost_estimate=cost,
    )(q, key, val)
    return out, m


def fepam_forward(Q, S, R, Pos, is_training=True):
    """JAX/Pallas equivalent of fePAM.forward.

    Q, S, R : (B, C, H, W) float32 (NCHW, as in PyTorch)
    Pos     : (xxs, yys), each (B, H*W*K) integer indices into S/R spatial dims
    returns : buffer (B, C, H, W), M_right_to_left (B, H*W, 1, K)

    `is_training` is accepted for API parity; the PyTorch module ignores it too.
    """
    xxs, yys = Pos
    B, C, h, w = Q.shape
    P = h * w
    px = xxs.reshape(B, -1).astype(jnp.int32)
    py = yys.reshape(B, -1).astype(jnp.int32)
    K = px.shape[1] // P
    idx = px * w + py                                             # (B, P*K): (p, k) order

    # Permute the tiny int32 index array to (k, p) order so BOTH gathers land
    # directly in the kernel's lane-dense (B, C, K, P) layout — no XLA
    # transposes of the K-inflated float tensors.
    idx_kp = idx.reshape(B, P, K).transpose(0, 2, 1).reshape(B, K * P)

    # Gather glue (data-dependent indexing) done by XLA outside the kernel.
    # TODO(synk): scalar-prefetch idx + in-kernel gather to skip this HBM round-trip.
    S_flat = S.reshape(B, C, P)
    R_flat = R.reshape(B, C, P)
    key = jnp.take_along_axis(S_flat, idx_kp[:, None, :], axis=2).reshape(B, C, K, P)
    val = jnp.take_along_axis(R_flat, idx_kp[:, None, :], axis=2).reshape(B, C, K, P)
    q = Q.reshape(B, C, P)                                        # (B, C, P)

    out, m = pam_attention(q, key, val)

    buffer = out.reshape(B, C, h, w)                              # (B, C, h, w)
    # Module contract requires (B, P, 1, K); the transpose here is small (K*P ints
    # of f32) compared to the K-inflated Key/Value traffic we removed above.
    M_right_to_left = m.transpose(0, 2, 1).reshape(B, P, 1, K)
    return buffer, M_right_to_left


def fepam_reference(Q, S, R, Pos):
    """Pure-JAX reference (mirrors the PyTorch math) for verification.

    Uses explicit multiply+sum (no backend-default reduced-precision matmul)
    so the comparison against the exact-f32 kernel is meaningful."""
    xxs, yys = Pos
    B, C, h, w = Q.shape
    P = h * w
    px = xxs.reshape(B, -1).astype(jnp.int32)
    py = yys.reshape(B, -1).astype(jnp.int32)
    K = px.shape[1] // P
    gather = jax.vmap(lambda fm, ix, iy: fm[:, ix, iy])
    Key = gather(S, px, py).reshape(B, C, P, K)                   # (B,C,P,K)
    Value = gather(R, px, py).reshape(B, C, P, K)                 # (B,C,P,K)
    q = Q.reshape(B, C, P)                                        # (B,C,P)
    score = jnp.sum(q[:, :, :, None] * Key, axis=1)               # (B,P,K)
    M = jax.nn.softmax(score, axis=-1)                            # (B,P,K)
    buf = jnp.sum(M[:, None, :, :] * Value, axis=-1)              # (B,C,P)
    return buf.reshape(B, C, h, w), M.reshape(B, P, 1, K)


if __name__ == "__main__":
    # fePAM has no learnable parameters (softmax only) -> nothing to initialize.
    rng = jax.random.PRNGKey(0)
    kQ, kS, kR, kx, ky = jax.random.split(rng, 5)

    B, C, h, w = 2, 4, 32, 32        # small NCHW feature maps; P = 1024
    K = 8                            # candidate positions per query pixel
    P = h * w

    Q = jax.random.normal(kQ, (B, C, h, w), dtype=jnp.float32)
    S = jax.random.normal(kS, (B, C, h, w), dtype=jnp.float32)
    R = jax.random.normal(kR, (B, C, h, w), dtype=jnp.float32)
    xxs = jax.random.randint(kx, (B, P * K), 0, h, dtype=jnp.int32)
    yys = jax.random.randint(ky, (B, P * K), 0, w, dtype=jnp.int32)
    Pos = (xxs, yys)

    buffer, M = fepam_forward(Q, S, R, Pos, is_training=True)
    jax.block_until_ready(buffer)
    jax.block_until_ready(M)

    # Sanity check vs. pure-JAX reference of the PyTorch math (exact f32 path).
    buf_ref, M_ref = fepam_reference(Q, S, R, Pos)
    assert buffer.shape == (B, C, h, w)
    assert M.shape == (B, P, 1, K)
    assert jnp.allclose(buffer, buf_ref, atol=1e-4, rtol=1e-4)
    assert jnp.allclose(M, M_ref, atol=1e-4, rtol=1e-4)

    print("KERNEL_OK")
</pallas_src>

<mosaic_0001>
module attributes {stable_mosaic.version = 11 : i64} {
  func.func @pam_kernel(%arg0: i32, %arg1: i32, %arg2: memref<1x4x1024xf32, #tpu.memory_space<vmem>>, %arg3: memref<1x4x8x1024xf32, #tpu.memory_space<vmem>>, %arg4: memref<1x4x8x1024xf32, #tpu.memory_space<vmem>>, %arg5: memref<1x4x1024xf32, #tpu.memory_space<vmem>>, %arg6: memref<1x8x1024xf32, #tpu.memory_space<vmem>>) attributes {dimension_semantics = [#tpu.dimension_semantics<parallel>, #tpu.dimension_semantics<parallel>], iteration_bounds = array<i64: 2, 1>, scalar_prefetch = 0 : i64, scratch_operands = 0 : i64, tpu.core_type = #tpu.core_type<tc>, window_params = [{transform_indices = @transform_0, window_bounds = array<i64: 1, 4, 1024>}, {transform_indices = @transform_1, window_bounds = array<i64: 1, 4, 8, 1024>}, {transform_indices = @transform_2, window_bounds = array<i64: 1, 4, 8, 1024>}, {transform_indices = @transform_3, window_bounds = array<i64: 1, 4, 1024>}, {transform_indices = @transform_4, window_bounds = array<i64: 1, 8, 1024>}]} {
    %c0 = arith.constant 0 : index
    %c0_0 = arith.constant 0 : index
    %c0_1 = arith.constant 0 : index
    %0 = vector.load %arg2[%c0, %c0_0, %c0_1] : memref<1x4x1024xf32, #tpu.memory_space<vmem>>, vector<1x4x1024xf32>
    %1 = vector.shape_cast %0 : vector<1x4x1024xf32> to vector<4x1024xf32>
    %c0_2 = arith.constant 0 : index
    %c0_3 = arith.constant 0 : index
    %c0_4 = arith.constant 0 : index
    %c0_5 = arith.constant 0 : index
    %2 = vector.load %arg3[%c0_2, %c0_3, %c0_4, %c0_5] : memref<1x4x8x1024xf32, #tpu.memory_space<vmem>>, vector<1x1x8x1024xf32>
    %3 = vector.shape_cast %2 : vector<1x1x8x1024xf32> to vector<8x1024xf32>
    %4 = vector.extract_strided_slice %1 {offsets = [0, 0], sizes = [1, 1024], strides = [1, 1]} : vector<4x1024xf32> to vector<1x1024xf32>
    %5 = vector.broadcast %4 : vector<1x1024xf32> to vector<8x1024xf32>
    %6 = arith.mulf %3, %5 : vector<8x1024xf32>
    %c0_6 = arith.constant 0 : index
    %c1 = arith.constant 1 : index
    %c0_7 = arith.constant 0 : index
    %c0_8 = arith.constant 0 : index
    %7 = vector.load %arg3[%c0_6, %c1, %c0_7, %c0_8] : memref<1x4x8x1024xf32, #tpu.memory_space<vmem>>, vector<1x1x8x1024xf32>
    %8 = vector.shape_cast %7 : vector<1x1x8x1024xf32> to vector<8x1024xf32>
    %9 = vector.extract_strided_slice %1 {offsets = [1, 0], sizes = [1, 1024], strides = [1, 1]} : vector<4x1024xf32> to vector<1x1024xf32>
    %10 = vector.broadcast %9 : vector<1x1024xf32> to vector<8x1024xf32>
    %11 = arith.mulf %8, %10 : vector<8x1024xf32>
    %12 = arith.addf %6, %11 : vector<8x1024xf32>
    %c0_9 = arith.constant 0 : index
    %c2 = arith.constant 2 : index
    %c0_10 = arith.constant 0 : index
    %c0_11 = arith.constant 0 : index
    %13 = vector.load %arg3[%c0_9, %c2, %c0_10, %c0_11] : memref<1x4x8x1024xf32, #tpu.memory_space<vmem>>, vector<1x1x8x1024xf32>
    %14 = vector.shape_cast %13 : vector<1x1x8x1024xf32> to vector<8x1024xf32>
    %15 = vector.extract_strided_slice %1 {offsets = [2, 0], sizes = [1, 1024], strides = [1, 1]} : vector<4x1024xf32> to vector<1x1024xf32>
    %16 = vector.broadcast %15 : vector<1x1024xf32> to vector<8x1024xf32>
    %17 = arith.mulf %14, %16 : vector<8x1024xf32>
    %18 = arith.addf %12, %17 : vector<8x1024xf32>
    %c0_12 = arith.constant 0 : index
    %c3 = arith.constant 3 : index
    %c0_13 = arith.constant 0 : index
    %c0_14 = arith.constant 0 : index
    %19 = vector.load %arg3[%c0_12, %c3, %c0_13, %c0_14] : memref<1x4x8x1024xf32, #tpu.memory_space<vmem>>, vector<1x1x8x1024xf32>
    %20 = vector.shape_cast %19 : vector<1x1x8x1024xf32> to vector<8x1024xf32>
    %21 = vector.extract_strided_slice %1 {offsets = [3, 0], sizes = [1, 1024], strides = [1, 1]} : vector<4x1024xf32> to vector<1x1024xf32>
    %22 = vector.broadcast %21 : vector<1x1024xf32> to vector<8x1024xf32>
    %23 = arith.mulf %20, %22 : vector<8x1024xf32>
    %24 = arith.addf %18, %23 : vector<8x1024xf32>
    %cst = arith.constant dense<0xFF800000> : vector<1024xf32>
    %25 = vector.multi_reduction <maximumf>, %24, %cst [0] : vector<8x1024xf32> to vector<1024xf32>
    %26 = vector.shape_cast %25 : vector<1024xf32> to vector<1x1024xf32>
    %27 = vector.broadcast %26 : vector<1x1024xf32> to vector<8x1024xf32>
    %28 = arith.subf %24, %27 : vector<8x1024xf32>
    %29 = math.exp %28 : vector<8x1024xf32>
    %cst_15 = arith.constant dense<0.000000e+00> : vector<1024xf32>
    %30 = vector.multi_reduction <add>, %29, %cst_15 [0] : vector<8x1024xf32> to vector<1024xf32>
    %31 = vector.shape_cast %30 : vector<1024xf32> to vector<1x1024xf32>
    %32 = vector.broadcast %31 : vector<1x1024xf32> to vector<8x1024xf32>
    %33 = arith.divf %29, %32 : vector<8x1024xf32>
    %c0_16 = arith.constant 0 : index
    %c0_17 = arith.constant 0 : index
    %c0_18 = arith.constant 0 : index
    %34 = vector.load %arg6[%c0_16, %c0_17, %c0_18] : memref<1x8x1024xf32, #tpu.memory_space<vmem>>, vector<1x8x1024xf32>
    %35 = vector.shape_cast %34 : vector<1x8x1024xf32> to vector<8x1024xf32>
    %36 = vector.shape_cast %33 : vector<8x1024xf32> to vector<1x8x1024xf32>
    tpu.vector_store %arg6[%c0_16, %c0_17, %c0_18], %36 {strides = array<i32>} : memref<1x8x1024xf32, #tpu.memory_space<vmem>>, vector<1x8x1024xf32>,
    %c0_19 = arith.constant 0 : index
    %c0_20 = arith.constant 0 : index
    %c0_21 = arith.constant 0 : index
    %c0_22 = arith.constant 0 : index
    %37 = vector.load %arg4[%c0_19, %c0_20, %c0_21, %c0_22] : memref<1x4x8x1024xf32, #tpu.memory_space<vmem>>, vector<1x1x8x1024xf32>
    %38 = vector.shape_cast %37 : vector<1x1x8x1024xf32> to vector<8x1024xf32>
    %39 = arith.mulf %33, %38 : vector<8x1024xf32>
    %cst_23 = arith.constant dense<0.000000e+00> : vector<1024xf32>
    %40 = vector.multi_reduction <add>, %39, %cst_23 [0] : vector<8x1024xf32> to vector<1024xf32>
    %41 = vector.shape_cast %40 : vector<1024xf32> to vector<1x1024xf32>
    %c0_24 = arith.constant 0 : index
    %c1_25 = arith.constant 1 : index
    %c0_26 = arith.constant 0 : index
    %c0_27 = arith.constant 0 : index
    %42 = vector.load %arg4[%c0_24, %c1_25, %c0_26, %c0_27] : memref<1x4x8x1024xf32, #tpu.memory_space<vmem>>, vector<1x1x8x1024xf32>
    %43 = vector.shape_cast %42 : vector<1x1x8x1024xf32> to vector<8x1024xf32>
    %44 = arith.mulf %33, %43 : vector<8x1024xf32>
    %cst_28 = arith.constant dense<0.000000e+00> : vector<1024xf32>
    %45 = vector.multi_reduction <add>, %44, %cst_28 [0] : vector<8x1024xf32> to vector<1024xf32>
    %46 = vector.shape_cast %45 : vector<1024xf32> to vector<1x1024xf32>
    %c0_29 = arith.constant 0 : index
    %c2_30 = arith.constant 2 : index
    %c0_31 = arith.constant 0 : index
    %c0_32 = arith.constant 0 : index
    %47 = vector.load %arg4[%c0_29, %c2_30, %c0_31, %c0_32] : memref<1x4x8x1024xf32, #tpu.memory_space<vmem>>, vector<1x1x8x1024xf32>
    %48 = vector.shape_cast %47 : vector<1x1x8x1024xf32> to vector<8x1024xf32>
    %49 = arith.mulf %33, %48 : vector<8x1024xf32>
    %cst_33 = arith.constant dense<0.000000e+00> : vector<1024xf32>
    %50 = vector.multi_reduction <add>, %49, %cst_33 [0] : vector<8x1024xf32> to vector<1024xf32>
    %51 = vector.shape_cast %50 : vector<1024xf32> to vector<1x1024xf32>
    %c0_34 = arith.constant 0 : index
    %c3_35 = arith.constant 3 : index
    %c0_36 = arith.constant 0 : index
    %c0_37 = arith.constant 0 : index
    %52 = vector.load %arg4[%c0_34, %c3_35, %c0_36, %c0_37] : memref<1x4x8x1024xf32, #tpu.memory_space<vmem>>, vector<1x1x8x1024xf32>
    %53 = vector.shape_cast %52 : vector<1x1x8x1024xf32> to vector<8x1024xf32>
    %54 = arith.mulf %33, %53 : vector<8x1024xf32>
    %cst_38 = arith.constant dense<0.000000e+00> : vector<1024xf32>
    %55 = vector.multi_reduction <add>, %54, %cst_38 [0] : vector<8x1024xf32> to vector<1024xf32>
    %56 = vector.shape_cast %55 : vector<1024xf32> to vector<1x1024xf32>
    %57 = tpu.concatenate %41, %46, %51, %56 in 0 : vector<1x1024xf32>, vector<1x1024xf32>, vector<1x1024xf32>, vector<1x1024xf32> -> vector<4x1024xf32>
    %c0_39 = arith.constant 0 : index
    %c0_40 = arith.constant 0 : index
    %c0_41 = arith.constant 0 : index
    %58 = vector.load %arg5[%c0_39, %c0_40, %c0_41] : memref<1x4x1024xf32, #tpu.memory_space<vmem>>, vector<1x4x1024xf32>
    %59 = vector.shape_cast %58 : vector<1x4x1024xf32> to vector<4x1024xf32>
    %60 = vector.shape_cast %57 : vector<4x1024xf32> to vector<1x4x1024xf32>
    tpu.vector_store %arg5[%c0_39, %c0_40, %c0_41], %60 {strides = array<i32>} : memref<1x4x1024xf32, #tpu.memory_space<vmem>>, vector<1x4x1024xf32>,
    return
  }
  func.func @transform_0(%arg0: i32, %arg1: i32) -> (i32, i32, i32) {
    %c0_i32 = arith.constant 0 : i32
    %c0_i32_0 = arith.constant 0 : i32
    return %arg0, %c0_i32, %arg1 : i32, i32, i32
  }
  func.func @transform_1(%arg0: i32, %arg1: i32) -> (i32, i32, i32, i32) {
    %c0_i32 = arith.constant 0 : i32
    %c0_i32_0 = arith.constant 0 : i32
    %c0_i32_1 = arith.constant 0 : i32
    return %arg0, %c0_i32, %c0_i32_0, %arg1 : i32, i32, i32, i32
  }
  func.func @transform_2(%arg0: i32, %arg1: i32) -> (i32, i32, i32, i32) {
    %c0_i32 = arith.constant 0 : i32
    %c0_i32_0 = arith.constant 0 : i32
    %c0_i32_1 = arith.constant 0 : i32
    return %arg0, %c0_i32, %c0_i32_0, %arg1 : i32, i32, i32, i32
  }
  func.func @transform_3(%arg0: i32, %arg1: i32) -> (i32, i32, i32) {
    %c0_i32 = arith.constant 0 : i32
    %c0_i32_0 = arith.constant 0 : i32
    return %arg0, %c0_i32, %arg1 : i32, i32, i32
  }
  func.func @transform_4(%arg0: i32, %arg1: i32) -> (i32, i32, i32) {
    %c0_i32 = arith.constant 0 : i32
    %c0_i32_0 = arith.constant 0 : i32
    return %arg0, %c0_i32, %arg1 : i32, i32, i32
  }
}

</mosaic_0001>

<bundles_post_ra>
// kernel: tpu_custom_call.1
= control target key start
LH: loop header
LB: loop body
LE: loop exit
PB: predicated region body
PF: predicated region fallthrough
CT: control target
= control target key end

     0   :  { %s2310_s0 = inlined_call_operand.hbm [shape: f32[2,4,1024], index: 0, kind: input, shape index: {}]   ;;  %s2311_s1 = inlined_call_operand.hbm [shape: f32[2,4,8,1024], index: 1, kind: input, shape index: {}]   ;;  %s2312_s2 = inlined_call_operand.hbm [shape: f32[2,4,8,1024], index: 2, kind: input, shape index: {}]   ;;  %s2313_s3 = inlined_call_operand.hbm [shape: f32[2,4,1024], index: 3, kind: output, shape index: {0}]   ;;  %s2314_s4 = inlined_call_operand.hbm [shape: f32[2,8,1024], index: 4, kind: output, shape index: {1}]  }
   0x1   :  { %2318 = sst [smem:[#allocation19_spill]] %s2311_s1 }
   0x2   :  { %10 = vsyncpa [#allocation3], 0 }
   0x3   :  { %12 = vsyncpa [#allocation3 + $0x1], 0 }
   0x4   :  { %13 = vsyncpa [#allocation6], 0 }
   0x5   :  { %15 = vsyncpa [#allocation6 + $0x1], 0 }
   0x6   :  { %16 = vsyncpa [#allocation4], 0 }
   0x7   :  { %18 = vsyncpa [#allocation4 + $0x1], 0 }
   0x8   :  { %19 = vsyncpa [#allocation10], 0 }
   0x9   :  { %21 = vsyncpa [#allocation10 + $0x1], 0  ;;  %s1733_s15 = smov 0   ;;  %s1735_s16 = smov 0  }
   0xa   :  { %s1737_s17 = smov 0   ;;  %s1739_s18 = smov 0  }
   0xb   :  { %s1741_s19 = smov 0   ;;  %s1743_s20 = smov 0  }
   0xc LB: > { %2319 = sst [smem:[#allocation15_spill]] %s1692_s17  ;;  %s1764_s21 = sadd.s32 4294967295, %s1704_s20   ;;  %s1704_s20 = sphi %s1743_s20, %s27_s20   ;;  %s1700_s19 = sphi %s1741_s19, %s2360_s19   ;;  %s1696_s18 = sphi %s1739_s18, %s2359_s18   ;;  %s1692_s17 = sphi %s1737_s17, %s2355_s17   ;;  %s1688_s16 = sphi %s1735_s16, %s2358_s16   ;;  %s1684_s15 = sphi %s1733_s15, %s2357_s15  }
   0xd   : > { %s1306_s22 = sadd.s32 4294967294, %s1704_s20   ;;  %s39_s23 = sadd.s32 1, %s1700_s19 }
   0xe   : > { %s48_s24 = sadd.s32 1, %s1692_s17  ;;  %p41_p0 = scmp.ge.s32.totalorder %s39_s23, 2 }
   0xf   : > { %p55_p1 = scmp.ne.s32.totalorder %s1692_s17, %s1688_s16  ;;  %p56_p2 = scmp.eq.s32.totalorder %s1704_s20, 0 }
  0x10   : > { %p61_p3 = scmp.ne.s32.totalorder %s1688_s16, %s1684_s15  ;;  %s2362_s23 = smov (%p41_p0, %s39_s23), 0 }
  0x11   : > { %2320 = sst [smem:[#allocation16_spill]] %s2362_s23  ;;  %p1776_p4 = por %p56_p2, %p55_p1 }
  0x12   : > { %p62_p5 = scmp.eq.s32.totalorder %s1764_s21, 0  ;;  %s43_s26 = ssub.s32 %s1700_s19, %s2362_s23 }
  0x13   : > { %p143_p6 = scmp.eq.s32.totalorder %s1764_s21, 1  ;;  %p46_p7 = scmp.eq.s32.totalorder %s43_s26, 0 }
  0x14   : > { %p1784_p8 = por %p62_p5, %p61_p3  ;;  %p149_p10 = scmp.eq.s32.totalorder %s1306_s22, 1 }
  0x15   : > { %p1788_p9 = por %p143_p6, %p55_p1  ;;  %p1308_p12 = scmp.ge.s32.totalorder %s1704_s20, 2 }
  0x16   : > { %s1793_s29 = scalar_select %p46_p7, %s1692_s17, %s48_s24  }
  0x17   : > { %p1795_p11 = por %p149_p10, %p61_p3  ;;  %p1412_p13 = scmp.lt.s32.totalorder %s1704_s20, 2 }
  0x18   : > { %2324 = sst [smem:[#allocation17_spill]] %s1793_s29  ;;  %s1802_s5 = sand.u32 1, %s1692_s17  }
  0x19   : > { %s2325_s30 = scalar_select %p1795_p11, 1, 0 }
  0x1a   : > { %s219_s6 = sand.u32 1, %s1704_s20   ;;  %s1312_s7 = sshll.u32 %s1802_s5, 8 }
  0x1b   : > { %2326 = sst [smem:[#allocation18_spill]] %s2325_s30  ;;  %p1808_p0 = pnand %p1412_p13, %p1776_p4 }
  0x1c   : > { %s1381_s9 = sshll.u32 %s1700_s19, 8  ;;  %s2328_s1 = sld [smem:[#allocation19_spill]] }
  0x1d   : > { %s223_s14 = scalar_lea.vmem [#allocation5], %s1312_s7  ;;  %s220_s24 = scalar_lea.sflag [#allocation6], %s219_s6 }
  0x1e   : > { %s233_s22 = sshll.u32 %s223_s14, 4  ;;  %s1706_s25 = smov 1024   ;;  %s234_s22 = int_to_ptr.vmem [resolvable:$true] %s233_s22 }
  0x1f   : > { %s1707_s26 = smov 64   ;;  %s254_s17 = scalar_lea.hbm %s2312_s2, %s1381_s9 }
  0x20   : > { %s255_s10 = sshll.u32 %s254_s17, 4  ;;  %s247_s11 = scalar_lea.vmem [#allocation7], %s1312_s7  ;;  %s256_s10 = int_to_ptr.hbm [resolvable:$true] %s255_s10 }
  0x21   : > { %p1318_p1 = scmp.ge.s32.totalorder %s1704_s20, 1  ;;  %p265_p2 = scmp.lt.s32.totalorder %s1704_s20, 3 }
  0x22   : > { %s230_s12 = scalar_lea.hbm %s2328_s1, %s1381_s9  ;;  %s1309_s6 = sshll.u32 %s1802_s5, 5 }
  0x23   : > { %s231_s13 = sshll.u32 %s230_s12, 4  ;;  %s257_s12 = sshll.u32 %s247_s11, 4  ;;  %s232_s13 = int_to_ptr.hbm [resolvable:$true] %s231_s13  ;;  %s258_s12 = int_to_ptr.vmem [resolvable:$true] %s257_s12 }
  0x24   : > { %1401 = dma.hbm_to_vmem [thread:$0]  (!%p1808_p0), %s232_s13, 4096, %s234_s22, %s220_s24, %s1706_s25, %s1706_s25, %s1707_s26  }
  0x25   : > { %p266_p3 = pnand %p1318_p1, %p265_p2  ;;  %s1380_s14 = sshll.u32 %s1700_s19, 5 }
  0x26   : > { %s208_s13 = scalar_lea.hbm %s2310_s0, %s1380_s14  ;;  %s201_s23 = scalar_lea.vmem [#allocation2], %s1309_s6 }
  0x27   : > { %s210_s22 = sshll.u32 %s208_s13, 4  ;;  %s212_s29 = sshll.u32 %s201_s23, 4  ;;  %s211_s22 = int_to_ptr.hbm [resolvable:$true] %s210_s22  ;;  %s213_s29 = int_to_ptr.vmem [resolvable:$true] %s212_s29 }
  0x28   : > { %s198_s17 = scalar_lea.sflag [#allocation3], %s1802_s5  ;;  %269 = sbr.rel (%p266_p3) target bundleno = 221 (0xdd), region = 32 }
  0x29   : > { %1398 = dma.hbm_to_vmem [thread:$0]  (!%p1808_p0), %s211_s22, 512, %s213_s29, %s198_s17  }
  0x2a   : > { %1404 = dma.hbm_to_vmem [thread:$0]  (!%p1808_p0), %s256_s10, 4096, %s258_s12, %s220_s24, %s1706_s25, %s1706_s25, %s1707_s26  }
  0x2b   : > { %s1834_s7 = sand.u32 (!%p266_p3), 1, %s1688_s16  }
  0x2c   : > { %s1319_s1 = sshll.u32 (!%p266_p3), %s1834_s7, 5  ;;  %s272_s30 = scalar_lea.sflag (!%p266_p3), [#allocation3], %s1834_s7 }
  0x2d   : > { %s1840_s9 = scalar_lea.vmem [#allocation2], %s1319_s1 }
  0x2e   : > { %1667 = dma.done.wait (%p1784_p8), %s272_s30, 512  }
  0x2f   : > { %1669 = vsyncadd (%p1784_p8), %s272_s30, 4294966784  ;;  %s281_s5 = sand.u32 1, %s1764_s21   ;;  %s1320_s8 = sshll.u32 %s1834_s7, 8 }
  0x30   : > { %s282_s24 = scalar_lea.sflag [#allocation6], %s281_s5  ;;  %s1850_s25 = scalar_lea.vmem [#allocation5], %s1320_s8 }
  0x31   : > { %1671 = dma.done.wait (%p1784_p8), %s282_s24, 8192  }
  0x32   : > { %1673 = vsyncadd (%p1784_p8), %s282_s24, 4294959104  ;;  %v341_v0 = vld [vmem:[%s1840_s9] sm:$0xff]  ;;  %v346_v9 = vld [vmem:[%s1850_s25 + $0x8] sm:$0xff]  ;;  %s1323_s21 = sshll.u32 %s1834_s7, 6  ;;  %s2086_s26 = scalar_lea.vmem [#allocation7], %s1320_s8 }
  0x33   : > { %v345_v1 = vld [vmem:[%s1850_s25] sm:$0xff]  ;;  %v357_v2 = vperm.slane %v341_v0, 0  ;;  %v398_v4 = vperm.slane %v341_v0, 1  ;;  %v447_v5 = vperm.slane %v341_v0, 2  ;;  %v496_v6 = vperm.slane %v341_v0, 3  ;;  %v1325_v17 = vld [vmem:[%s1850_s25 + $0x48] sm:$0xff] }
  0x34   : > { %v1324_v3 = vld [vmem:[%s1850_s25 + $0x40] sm:$0xff]  ;;  %v358_v10 = vperm.slane %v341_v0, 4  ;;  %v399_v11 = vperm.slane %v341_v0, 5  ;;  %v448_v12 = vperm.slane %v341_v0, 6  ;;  %v1333_v18 = vld [vmem:[%s1850_s25 + $0x88] sm:$0xff]  ;;  %v497_v22 = vperm.slane %v341_v0, 7 }
  0x35   : > { %v1332_v7 = vld [vmem:[%s1850_s25 + $0x80] sm:$0xff]  ;;  %v373_v13 = vperm.slane %v357_v2, 0  ;;  %v414_v14 = vperm.slane %v398_v4, 1  ;;  %v463_v15 = vperm.slane %v447_v5, 2  ;;  %v512_v16 = vperm.slane %v496_v6, 3  ;;  %v1341_v27 = vld [vmem:[%s1850_s25 + $0xc8] sm:$0xff] }
  0x36   : > { %v1340_v8 = vld [vmem:[%s1850_s25 + $0xc0] sm:$0xff]  ;;  %v374_v19 = vperm.slane %v358_v10, 0  ;;  %v415_v20 = vperm.slane %v399_v11, 1  ;;  %v464_v21 = vperm.slane %v448_v12, 2  ;;  %v342_v28 = vld [vmem:[%s1840_s9 + $0x8] sm:$0xff]  ;;  %v513_v32 = vperm.slane %v497_v22, 3 }
  0x37   : > { %v381_v23 = vmul.f32 %v373_v13, %v345_v1  ;;  %v422_v24 = vmul.f32 %v1324_v3, %v414_v14  ;;  %v471_v25 = vmul.f32 %v1332_v7, %v463_v15  ;;  %v520_v26 = vmul.f32 %v1340_v8, %v512_v16  ;;  %v347_v39 = vld [vmem:[%s1850_s25 + $0x10] sm:$0xff]  ;;  %v348_v49 = vld [vmem:[%s1850_s25 + $0x18] sm:$0xff]  ;;  %v349_v14 = vld [vmem:[%s1850_s25 + $0x20] sm:$0xff]  ;;  %s2021_s27 = scalar_lea.vmem [#allocation9], %s1323_s21  ;;  %s1384_s10 = sshll.u32 %s1696_s18, 6 }
  0x38   : > { %v382_v29 = vmul.f32 %v374_v19, %v346_v9  ;;  %v423_v30 = vmul.f32 %v1325_v17, %v415_v20  ;;  %v472_v31 = vmul.f32 %v1333_v18, %v464_v21  ;;  %v359_v34 = vperm.slane %v342_v28, 0  ;;  %v1326_v40 = vld [vmem:[%s1850_s25 + $0x50] sm:$0xff]  ;;  %v1327_v58 = vld [vmem:[%s1850_s25 + $0x58] sm:$0xff]  ;;  %v1328_v15 = vld [vmem:[%s1850_s25 + $0x60] sm:$0xff]  ;;  %s2164_s6 = scalar_lea.hbm %s2314_s4, %s1384_s10  ;;  %s1133_s14 = sshll.u32 %s2021_s27, 4  ;;  %s2187_s14 = int_to_ptr.vmem [resolvable:$true] %s1133_s14 }
  0x39   : > { %v430_v33 = vadd.f32 %v422_v24, %v381_v23  ;;  %v400_v35 = vperm.slane %v342_v28, 1  ;;  %v449_v36 = vperm.slane %v342_v28, 2  ;;  %v521_v38 = vmul.f32 %v1341_v27, %v513_v32  ;;  %v1334_v41 = vld [vmem:[%s1850_s25 + $0x90] sm:$0xff]  ;;  %v1335_v6 = vld [vmem:[%s1850_s25 + $0x98] sm:$0xff]  ;;  %s1135_s13 = sshll.u32 %s2164_s6, 4  ;;  %s1101_s22 = scalar_lea.sflag [#allocation10], %s1834_s7  ;;  %s2189_s13 = int_to_ptr.hbm [resolvable:$true] %s1135_s13 }
  0x3a   : > { %v431_v37 = vadd.f32 %v423_v30, %v382_v29  ;;  %v498_v42 = vperm.slane %v342_v28, 3  ;;  %v360_v43 = vperm.slane %v342_v28, 4  ;;  %v375_v45 = vperm.slane %v359_v34, 0  ;;  %v1342_v48 = vld [vmem:[%s1850_s25 + $0xd0] sm:$0xff]  ;;  %v1343_v7 = vld [vmem:[%s1850_s25 + $0xd8] sm:$0xff]  ;;  %s1600_s23 = sshra.s32 %s2189_s13, 4  ;;  %s1601_s23 = int_to_ptr.hbm [resolvable:$true] %s1600_s23 }
  0x3b   : > { %v479_v44 = vadd.f32 %v471_v25, %v430_v33  ;;  %v416_v46 = vperm.slane %v400_v35, 1  ;;  %v465_v47 = vperm.slane %v449_v36, 2  ;;  %v401_v53 = vperm.slane %v342_v28, 5  ;;  %v1878_v3 = vld [vmem:[%s1840_s9 + $0x10] sm:$0xff]  ;;  %v1344_v36 = vld [vmem:[%s1850_s25 + $0xe0] sm:$0xff]  ;;  %s1602_s29 = scalar_lea.hbm %s1601_s23, 64  ;;  %p1607_p7 = scmp.lt.s32.totalorder %s1601_s23, %s2314_s4 }
  0x3c   : > { %v480_v50 = vadd.f32 %v472_v31, %v431_v37  ;;  %v514_v51 = vperm.slane %v498_v42, 3  ;;  %v376_v52 = vperm.slane %v360_v43, 0  ;;  %v383_v55 = vmul.f32 %v375_v45, %v347_v39  ;;  %v1336_v31 = vld [vmem:[%s1850_s25 + $0xa0] sm:$0xff]  ;;  %v350_v42 = vld [vmem:[%s1850_s25 + $0x28] sm:$0xff]  ;;  %p1603_p4 = scmp.ne.s32.totalorder %s1601_s23, %s1602_s29 }
  0x3d   : > { %v1871_v54 = vadd.f32 %v520_v26, %v479_v44  ;;  %v424_v56 = vmul.f32 %v1326_v40, %v416_v46  ;;  %v473_v57 = vmul.f32 %v1334_v41, %v465_v47  ;;  %v417_v62 = vperm.slane %v401_v53, 1 }
  0x3e   : > { %v1874_v59 = vadd.f32 %v521_v38, %v480_v50  ;;  %v522_v60 = vmul.f32 %v1342_v48, %v514_v51  ;;  %v384_v61 = vmul.f32 %v376_v52, %v348_v49  ;;  %v450_v1 = vperm.slane %v342_v28, 6  ;;  %v1329_v51 = vld [vmem:[%s1850_s25 + $0x68] sm:$0xff]  ;;  %p1604_p5 = pnand %p1603_p4, %p1788_p9 }
  0x3f   : > { %v536_v63 = vrot.slane %v1871_v54, 4  ;;  %v432_v0 = vadd.f32 %v424_v56, %v383_v55  ;;  %v499_v2 = vperm.slane %v342_v28, 7  ;;  %v425_v5 = vmul.f32 %v1327_v58, %v417_v62 }
  0x40   : > { %v542_v4 = vrot.slane %v1874_v59, 4  ;;  %v361_v8 = vperm.slane %v1878_v3, 0  ;;  %v402_v9 = vperm.slane %v1878_v3, 1  ;;  %v466_v12 = vperm.slane %v450_v1, 2  ;;  %v1337_v1 = vld [vmem:[%s1850_s25 + $0xa8] sm:$0xff]  ;;  %p1605_p6 = pneg %p1604_p5 }
  0x41   : > { %v537_v10 = vmax.f32 %v1871_v54, %v536_v63  ;;  %v481_v11 = vadd.f32 %v473_v57, %v432_v0  ;;  %v515_v13 = vperm.slane %v499_v2, 3  ;;  %v433_v17 = vadd.f32 %v425_v5, %v384_v61 }
  0x42   : > { %v543_v16 = vmax.f32 %v1874_v59, %v542_v4  ;;  %v377_v18 = vperm.slane %v361_v8, 0  ;;  %v418_v19 = vperm.slane %v402_v9, 1  ;;  %v474_v22 = vmul.f32 %v1335_v6, %v466_v12  ;;  %v1345_v8 = vld [vmem:[%s1850_s25 + $0xe8] sm:$0xff] }
  0x43   : > { %v538_v20 = vrot.slane %v537_v10, 2  ;;  %v1889_v21 = vadd.f32 %v522_v60, %v481_v11  ;;  %v523_v23 = vmul.f32 %v1343_v7, %v515_v13  ;;  %v451_v27 = vperm.slane %v1878_v3, 2 }
  0x44   : > { %v544_v24 = vrot.slane %v543_v16, 2  ;;  %v385_v25 = vmul.f32 %v377_v18, %v349_v14  ;;  %v426_v26 = vmul.f32 %v1328_v15, %v418_v19  ;;  %v482_v30 = vadd.f32 %v474_v22, %v433_v17  ;;  %v1915_v14 = vld [vmem:[%s1840_s9 + $0x18] sm:$0xff]  ;;  %s1606_s9 = scalar_lea.hbm %s2314_s4, 128 }
  0x45   : > { %v539_v28 = vmax.f32 %v537_v10, %v538_v20  ;;  %v548_v29 = vrot.slane %v1889_v21, 4  ;;  %v500_v32 = vperm.slane %v1878_v3, 3  ;;  %v467_v35 = vperm.slane %v451_v27, 2  ;;  %v351_v20 = vld [vmem:[%s1850_s25 + $0x30] sm:$0xff]  ;;  %p1608_p8 = scmp.lt.s32.totalorder %s1606_s9, %s1602_s29 }
  0x46   : > { %v545_v33 = vmax.f32 %v543_v16, %v544_v24  ;;  %v434_v34 = vadd.f32 %v426_v26, %v385_v25  ;;  %v362_v37 = vperm.slane %v1878_v3, 4  ;;  %v1898_v40 = vadd.f32 %v523_v23, %v482_v30  ;;  %v1330_v25 = vld [vmem:[%s1850_s25 + $0x70] sm:$0xff] }
  0x47   : > { %v540_v38 = vrot.slane %v539_v28, 1  ;;  %v549_v39 = vmax.f32 %v1889_v21, %v548_v29  ;;  %v516_v41 = vperm.slane %v500_v32, 3  ;;  %v475_v44 = vmul.f32 %v1336_v31, %v467_v35  ;;  %v1338_v32 = vld [vmem:[%s1850_s25 + $0xb0] sm:$0xff]  ;;  %p1609_p10 = por %p1608_p8, %p1607_p7 }
  0x48   : > { %v546_v43 = vrot.slane %v545_v33, 1  ;;  %v378_v45 = vperm.slane %v362_v37, 0  ;;  %v403_v46 = vperm.slane %v1878_v3, 5  ;;  %v554_v49 = vrot.slane %v1898_v40, 4 }
  0x49   : > { %v541_v47 = vmax.f32 %v539_v28, %v540_v38  ;;  %v550_v48 = vrot.slane %v549_v39, 2  ;;  %v524_v50 = vmul.f32 %v1344_v36, %v516_v41  ;;  %v483_v53 = vadd.f32 %v475_v44, %v434_v34  ;;  %p1610_p13 = pnand %p1609_p10, %p1605_p6 }
  0x4a   : > { %v547_v52 = vmax.f32 %v545_v33, %v546_v43  ;;  %v386_v55 = vmul.f32 %v378_v45, %v350_v42  ;;  %v419_v56 = vperm.slane %v403_v46, 1  ;;  %v555_v60 = vmax.f32 %v1898_v40, %v554_v49  ;;  %v1346_v33 = vld [vmem:[%s1850_s25 + $0xf0] sm:$0xff] }
  0x4b   : > { %v584_v57 = vsub.f32 %v1871_v54, %v541_v47  ;;  %v551_v58 = vmax.f32 %v549_v39, %v550_v48  ;;  %v452_v61 = vperm.slane %v1878_v3, 6  ;;  %v1908_v63 = vadd.f32 %v524_v50, %v483_v53 }
  0x4c   : > { %v585_v62 = vsub.f32 %v1874_v59, %v547_v52  ;;  %v427_v0 = vmul.f32 %v1329_v51, %v419_v56  ;;  %v501_v2 = vperm.slane %v1878_v3, 7  ;;  %v556_v6 = vrot.slane %v555_v60, 2 }
  0x4d   : > { %v592_v4 = vmul.f32 1.442695, %v584_v57  ;;  %v552_v5 = vrot.slane %v551_v58, 1  ;;  %v468_v7 = vperm.slane %v452_v61, 2  ;;  %v560_v9 = vrot.slane %v1908_v63, 4 }
  0x4e   : > { %v594_v54 = vmul.f32 1.442695, %v585_v62  ;;  %v435_v10 = vadd.f32 %v427_v0, %v386_v55  ;;  %v517_v11 = vperm.slane %v501_v2, 3  ;;  %v557_v12 = vmax.f32 %v555_v60, %v556_v6 }
  0x4f   : > { %1464 = vpow2.f32 %v592_v4  ;;  %v553_v59 = vmax.f32 %v551_v58, %v552_v5  ;;  %v476_v13 = vmul.f32 %v1337_v1, %v468_v7  ;;  %v561_v3 = vmax.f32 %v1908_v63, %v560_v9  ;;  %v352_v7 = vld [vmem:[%s1850_s25 + $0x38] sm:$0xff] }
  0x50   : > { %1466 = vpow2.f32 %v594_v54  ;;  %v525_v15 = vmul.f32 %v1345_v8, %v517_v11  ;;  %v363_v16 = vperm.slane %v1915_v14, 0  ;;  %v558_v18 = vrot.slane %v557_v12, 1  ;;  %v1331_v11 = vld [vmem:[%s1850_s25 + $0x78] sm:$0xff] }
  0x51   : > { %v586_v17 = vsub.f32 %v1889_v21, %v553_v59  ;;  %v484_v19 = vadd.f32 %v476_v13, %v435_v10  ;;  %v404_v22 = vperm.slane %v1915_v14, 1  ;;  %v562_v23 = vrot.slane %v561_v3, 2 }
  0x52   : > { %v379_v24 = vperm.slane %v363_v16, 0  ;;  %v453_v26 = vperm.slane %v1915_v14, 2  ;;  %v502_v27 = vperm.slane %v1915_v14, 3  ;;  %v559_v29 = vmax.f32 %v557_v12, %v558_v18 }
  0x53   : > { %v596_v28 = vmul.f32 1.442695, %v586_v17  ;;  %v1925_v30 = vadd.f32 %v525_v15, %v484_v19  ;;  %v420_v31 = vperm.slane %v404_v22, 1  ;;  %v563_v21 = vmax.f32 %v561_v3, %v562_v23 }
  0x54   : > { %v387_v34 = vmul.f32 %v379_v24, %v351_v20  ;;  %v469_v35 = vperm.slane %v453_v26, 2  ;;  %v518_v36 = vperm.slane %v502_v27, 3  ;;  %v587_v38 = vsub.f32 %v1898_v40, %v559_v29  ;;  %v1339_v27 = vld [vmem:[%s1850_s25 + $0xb8] sm:$0xff] }
  0x55   : > { %v1929_v37 = vpop.eup %1464  ;;  %1468 = vpow2.f32 %v596_v28  ;;  %v566_v39 = vrot.slane %v1925_v30, 4  ;;  %v428_v41 = vmul.f32 %v1330_v25, %v420_v31  ;;  %v564_v44 = vrot.slane %v563_v21, 1 }
  0x56   : > { %v1933_v42 = vpop.eup %1466  ;;  %v608_v43 = vrot.slane %v1929_v37, 4  ;;  %v477_v45 = vmul.f32 %v1338_v32, %v469_v35  ;;  %v526_v46 = vmul.f32 %v1346_v33, %v518_v36  ;;  %v598_v48 = vmul.f32 1.442695, %v587_v38 }
  0x57   : > { %v614_v47 = vrot.slane %v1933_v42, 4  ;;  %v567_v49 = vmax.f32 %v1925_v30, %v566_v39  ;;  %v436_v50 = vadd.f32 %v428_v41, %v387_v34  ;;  %v565_v52 = vmax.f32 %v563_v21, %v564_v44 }
  0x58   : > { %v609_v51 = vadd.f32 %v1929_v37, %v608_v43  ;;  %v364_v40 = vperm.slane %v1915_v14, 4  ;;  %v405_v53 = vperm.slane %v1915_v14, 5  ;;  %1470 = vpow2.f32 %v598_v48 }
  0x59   : > { %v615_v55 = vadd.f32 %v1933_v42, %v614_v47  ;;  %v568_v56 = vrot.slane %v567_v49, 2  ;;  %v485_v57 = vadd.f32 %v477_v45, %v436_v50  ;;  %v588_v60 = vsub.f32 %v1908_v63, %v565_v52 }
  0x5a   : > { %v610_v58 = vrot.slane %v609_v51, 2  ;;  %v380_v2 = vperm.slane %v364_v40, 0  ;;  %v421_v8 = vperm.slane %v405_v53, 1  ;;  %v454_v63 = vperm.slane %v1915_v14, 6 }
  0x5b   : > { %v1943_v61 = vpop.eup %1468  ;;  %v616_v62 = vrot.slane %v615_v55, 2  ;;  %v569_v0 = vmax.f32 %v567_v49, %v568_v56  ;;  %v1945_v1 = vadd.f32 %v526_v46, %v485_v57  ;;  %v600_v6 = vmul.f32 1.442695, %v588_v60 }
  0x5c   : > { %v611_v4 = vadd.f32 %v610_v58, %v609_v51  ;;  %v620_v5 = vrot.slane %v1943_v61, 4  ;;  %v388_v17 = vmul.f32 %v380_v2, %v352_v7  ;;  %v429_v22 = vmul.f32 %v1331_v11, %v421_v8 }
  0x5d   : > { %v617_v54 = vadd.f32 %v616_v62, %v615_v55  ;;  %v570_v9 = vrot.slane %v569_v0, 1  ;;  %v572_v10 = vrot.slane %v1945_v1, 4  ;;  %1472 = vpow2.f32 %v600_v6  ;;  %v1347_v55 = vld [vmem:[%s1850_s25 + $0xf8] sm:$0xff] }
  0x5e   : > { %v612_v59 = vrot.slane %v611_v4, 1  ;;  %v621_v12 = vadd.f32 %v1943_v61, %v620_v5  ;;  %v1953_v13 = vpop.eup %1470  ;;  %v470_v25 = vperm.slane %v454_v63, 2  ;;  %v437_v32 = vadd.f32 %v429_v22, %v388_v17 }
  0x5f   : > { %v618_v3 = vrot.slane %v617_v54, 1  ;;  %v571_v15 = vmax.f32 %v569_v0, %v570_v9  ;;  %v573_v16 = vmax.f32 %v1945_v1, %v572_v10  ;;  %v626_v20 = vrot.slane %v1953_v13, 4 }
  0x60   : > { %v613_v18 = vadd.f32 %v612_v59, %v611_v4  ;;  %v622_v19 = vrot.slane %v621_v12, 2  ;;  %v478_v34 = vmul.f32 %v1339_v27, %v470_v25  ;;  %v503_v35 = vperm.slane %v1915_v14, 7 }
  0x61   : > { %v619_v23 = vadd.f32 %v618_v3, %v617_v54  ;;  %v589_v24 = vsub.f32 %v1925_v30, %v571_v15  ;;  %v574_v26 = vrot.slane %v573_v16, 2  ;;  %v627_v31 = vadd.f32 %v1953_v13, %v626_v20 }
  0x62   : > { %1474 = vrcp.f32 %v613_v18  ;;  %v623_v29 = vadd.f32 %v622_v19, %v621_v12  ;;  %v665_v36 = vand.u32 2147483647, %v613_v18  ;;  %vm661_vm0 = vweird.f32 %v613_v18 }
  0x63   : > { %1476 = vrcp.f32 %v619_v23  ;;  %v1959_v28 = vpop.eup %1472  ;;  %v602_v21 = vmul.f32 1.442695, %v589_v24  ;;  %v628_v30 = vrot.slane %v627_v31, 2  ;;  %v575_v39 = vmax.f32 %v573_v16, %v574_v26 }
  0x64   : > { %v632_v33 = vrot.slane %v1959_v28, 4  ;;  %v624_v38 = vrot.slane %v623_v29, 1  ;;  %v667_v41 = vand.u32 2147483648, %v613_v18  ;;  %vm676_vm1 = vweird.f32 %v619_v23 }
  0x65   : > { %1478 = vpow2.f32 %v602_v21  ;;  %v680_v45 = vand.u32 2147483647, %v619_v23  ;;  %v629_v47 = vadd.f32 %v628_v30, %v627_v31  ;;  %v576_v14 = vrot.slane %v575_v39, 1 }
  0x66   : > { %v633_v43 = vadd.f32 %v1959_v28, %v632_v33  ;;  %v1965_v46 = vadd.f32 %v624_v38, %v623_v29  ;;  %v519_v51 = vperm.slane %v503_v35, 3  ;;  %vm1967_vm2 = vcmp.eq.f32.partialorder %v665_v36, 8.507059e+37 }
  0x67   : > { %v682_v53 = vand.u32 2147483648, %v619_v23  ;;  %v668_v57 = vor.u32 1.1754944e-38, %v667_v41  ;;  %v630_v58 = vrot.slane %v629_v47, 1  ;;  %v486_v0 = vadd.f32 %v478_v34, %v437_v32 }
  0x68   : > { %v1475_v44 = vpop.eup %1474  ;;  %v634_v50 = vrot.slane %v633_v43, 2  ;;  %1480 = vrcp.f32 %v1965_v46  ;;  %v577_v6 = vmax.f32 %v575_v39, %v576_v14  ;;  %v527_v7 = vmul.f32 %v1347_v55, %v519_v51 }
  0x69   : > { %v1477_v48 = vpop.eup %1476  ;;  %v657_v49 = vmul.f32 %v1475_v44, %v613_v18  ;;  %vm662_vm3 = vweird.f32 %v1475_v44  ;;  %v1975_v5 = vadd.f32 %v630_v58, %v629_v47  ;;  %vm1982_vm6 = vcmp.eq.f32.partialorder %v680_v45, 8.507059e+37 }
  0x6a   : > { %v672_v40 = vmul.f32 %v1477_v48, %v619_v23  ;;  %vm677_vm4 = vweird.f32 %v1477_v48  ;;  %v635_v62 = vadd.f32 %v634_v50, %v633_v43  ;;  %vm1978_vm5 = vmor %vm661_vm0, %vm662_vm3  ;;  %v683_v12 = vor.u32 1.1754944e-38, %v682_v53 }
  0x6b   : > { %v658_v56 = vsub.f32 1.0, %v657_v49  ;;  %v1973_v2 = vpop.eup %1478  ;;  %vm1990_vm7 = vmor %vm676_vm1, %vm677_vm4  ;;  %vm691_vm8 = vweird.f32 %v1965_v46  ;;  %1482 = vrcp.f32 %v1975_v5  ;;  %v695_v16 = vand.u32 2147483647, %v1965_v46 }
  0x6c   : > { %v673_v60 = vsub.f32 1.0, %v672_v40  ;;  %v636_v10 = vrot.slane %v635_v62, 1  ;;  %v638_v11 = vrot.slane %v1973_v2, 4  ;;  %v590_v22 = vsub.f32 %v1945_v1, %v577_v6 }
  0x6d   : > { %v659_v4 = vmul.f32 %v1475_v44, %v658_v56  ;;  %v2004_v23 = vadd.f32 %v527_v7, %v486_v0  ;;  %v697_v26 = vand.u32 2147483648, %v1965_v46  ;;  %v712_v32 = vand.u32 2147483648, %v1975_v5 }
  0x6e   : > { %v674_v54 = vmul.f32 %v1477_v48, %v673_v60  ;;  %v1481_v3 = vpop.eup %1480  ;;  %v1997_v17 = vadd.f32 %v636_v10, %v635_v62  ;;  %v639_v18 = vadd.f32 %v1973_v2, %v638_v11  ;;  %vm2025_vm10 = vcmp.eq.f32.partialorder %v695_v16, 8.507059e+37 }
  0x6f   : > { %v660_v63 = vadd.f32 %v1475_v44, %v659_v4  ;;  %v687_v20 = vmul.f32 %v1481_v3, %v1965_v46  ;;  %vm692_vm9 = vweird.f32 %v1481_v3  ;;  %v604_v35 = vmul.f32 1.442695, %v590_v22 }
  0x70   : > { %v675_v15 = vadd.f32 %v1477_v48, %v674_v54  ;;  %1484 = vrcp.f32 %v1997_v17  ;;  %v640_v33 = vrot.slane %v639_v18, 2  ;;  %v578_v36 = vrot.slane %v2004_v23, 4  ;;  %vm2034_vm11 = vmor %vm691_vm8, %vm692_vm9 }
  0x71   : > { %v664_v19 = vsel %vm1978_vm5, %v1475_v44, %v660_v63  ;;  %v688_v31 = vsub.f32 1.0, %v687_v20  ;;  %v1483_v21 = vpop.eup %1482  ;;  %v698_v38 = vor.u32 1.1754944e-38, %v697_v26  ;;  %vm706_vm12 = vweird.f32 %v1975_v5 }
  0x72   : > { %v669_v24 = vsel %vm1967_vm2, %v668_v57, %v664_v19  ;;  %v679_v25 = vsel %vm1990_vm7, %v1477_v48, %v675_v15  ;;  %v702_v30 = vmul.f32 %v1483_v21, %v1975_v5  ;;  %v710_v39 = vand.u32 2147483647, %v1975_v5 }
  0x73   : > { %v2013_v27 = vmul.f32 %v1929_v37, %v669_v24  ;;  %v684_v29 = vsel %vm1982_vm6, %v683_v12, %v679_v25  ;;  %v689_v37 = vmul.f32 %v1481_v3, %v688_v31  ;;  %v641_v43 = vadd.f32 %v640_v33, %v639_v18  ;;  %v1349_v33 = vld [vmem:[%s2086_s26 + $0x48] sm:$0xff] }
  0x74   : > { %v2018_v1 = vmul.f32 %v1933_v42, %v684_v29  ;;  %1486 = vpow2.f32 %v604_v35  ;;  %v579_v44 = vmax.f32 %v2004_v23, %v578_v36  ;;  %v703_v47 = vsub.f32 1.0, %v702_v30  ;;  %v784_v35 = vld [vmem:[%s2086_s26] sm:$0xff] }
  0x75   : > { %776 = vst [vmem:[%s2021_s27] sm:$0xff] %v2013_v27  ;;  %v690_v41 = vadd.f32 %v1481_v3, %v689_v37  ;;  %vm707_vm13 = vweird.f32 %v1483_v21  ;;  %v713_v46 = vor.u32 1.1754944e-38, %v712_v32  ;;  %vm721_vm14 = vweird.f32 %v1997_v17  ;;  %v785_v32 = vld [vmem:[%s2086_s26 + $0x8] sm:$0xff]  ;;  %v1348_v42 = vld [vmem:[%s2086_s26 + $0x40] sm:$0xff] }
  0x76   : > { %777 = vst [vmem:[%s2021_s27 + $0x8] sm:$0xff] %v2018_v1  ;;  %v1485_v45 = vpop.eup %1484  ;;  %v725_v50 = vand.u32 2147483647, %v1997_v17  ;;  %v642_v14 = vrot.slane %v641_v43, 1  ;;  %v704_v52 = vmul.f32 %v1483_v21, %v703_v47  ;;  %v727_v40 = vand.u32 2147483648, %v1997_v17  ;;  %vm2055_vm15 = vmor %vm706_vm12, %vm707_vm13  ;;  %v1356_v30 = vld [vmem:[%s2086_s26 + $0x80] sm:$0xff] }
  0x77   : > { %v694_v48 = vsel %vm2034_vm11, %v1481_v3, %v690_v41  ;;  %v717_v49 = vmul.f32 %v1485_v45, %v1997_v17  ;;  %v580_v53 = vrot.slane %v579_v44, 2  ;;  %vm722_vm0 = vweird.f32 %v1485_v45 }
  0x78   : > { %v699_v51 = vsel %vm2025_vm10, %v698_v38, %v694_v48  ;;  %v643_v58 = vadd.f32 %v642_v14, %v641_v43  ;;  %v705_v60 = vadd.f32 %v1483_v21, %v704_v52  ;;  %vm711_vm1 = vcmp.eq.f32.partialorder %v710_v39, 8.507059e+37  ;;  %vm723_vm2 = vmor %vm721_vm14, %vm722_vm0 }
  0x79   : > { %v2051_v55 = vmul.f32 %v1943_v61, %v699_v51  ;;  %v718_v57 = vsub.f32 1.0, %v717_v49  ;;  %v581_v62 = vmax.f32 %v579_v44, %v580_v53  ;;  %v728_v5 = vor.u32 1.1754944e-38, %v727_v40  ;;  %v1357_v44 = vld [vmem:[%s2086_s26 + $0x88] sm:$0xff] }
  0x7a   : > { %v2059_v0 = vpop.eup %1486  ;;  %1488 = vrcp.f32 %v643_v58  ;;  %v709_v61 = vsel %vm2055_vm15, %v1483_v21, %v705_v60  ;;  %vm726_vm3 = vcmp.eq.f32.partialorder %v725_v50, 8.507059e+37  ;;  %vm736_vm4 = vweird.f32 %v643_v58 }
  0x7b   : > { %778 = vst [vmem:[%s2021_s27 + $0x10] sm:$0xff] %v2051_v55  ;;  %v719_v4 = vmul.f32 %v1485_v45, %v718_v57  ;;  %v644_v6 = vrot.slane %v2059_v0, 4  ;;  %v582_v7 = vrot.slane %v581_v62, 1  ;;  %v714_v8 = vsel %vm711_vm1, %v713_v46, %v709_v61 }
  0x7c   : > { %v2069_v9 = vmul.f32 %v1953_v13, %v714_v8  ;;  %v740_v13 = vand.u32 2147483647, %v643_v58  ;;  %v742_v20 = vand.u32 2147483648, %v643_v58  ;;  %v793_v36 = vmul.f32 %v785_v32, %v2018_v1 }
  0x7d   : > { %v720_v54 = vadd.f32 %v1485_v45, %v719_v4  ;;  %v645_v10 = vadd.f32 %v2059_v0, %v644_v6  ;;  %v583_v11 = vmax.f32 %v581_v62, %v582_v7  ;;  %v858_v38 = vmul.f32 %v1349_v33, %v2018_v1 }
  0x7e   : > { %779 = vst [vmem:[%s2021_s27 + $0x18] sm:$0xff] %v2069_v9  ;;  %vm741_vm7 = vcmp.eq.f32.partialorder %v740_v13, 8.507059e+37  ;;  %v792_v43 = vmul.f32 %v784_v35, %v2013_v27  ;;  %v806_v47 = vrot.slane %v793_v36, 4  ;;  %v857_v46 = vmul.f32 %v1348_v42, %v2013_v27  ;;  %v1365_v42 = vld [vmem:[%s2086_s26 + $0xc8] sm:$0xff] }
  0x7f   : > { %v724_v63 = vsel %vm723_vm2, %v1485_v45, %v720_v54  ;;  %v646_v12 = vrot.slane %v645_v10, 2  ;;  %v591_v3 = vsub.f32 %v2004_v23, %v583_v11  ;;  %v871_v48 = vrot.slane %v858_v38, 4 }
  0x80   : > { %v729_v59 = vsel %vm726_vm3, %v728_v5, %v724_v63  ;;  %v1489_v15 = vpop.eup %1488  ;;  %v800_v14 = vrot.slane %v792_v43, 4  ;;  %v922_v51 = vmul.f32 %v1356_v30, %v2013_v27  ;;  %v923_v52 = vmul.f32 %v1357_v44, %v2018_v1 }
  0x81   : > { %v2076_v16 = vmul.f32 %v1959_v28, %v729_v59  ;;  %v732_v17 = vmul.f32 %v1489_v15, %v643_v58  ;;  %v647_v18 = vadd.f32 %v646_v12, %v645_v10  ;;  %v606_v19 = vmul.f32 1.442695, %v591_v3 }
  0x82   : > { %vm737_vm5 = vweird.f32 %v1489_v15  ;;  %v743_v28 = vor.u32 1.1754944e-38, %v742_v20  ;;  %v807_v53 = vadd.f32 %v806_v47, %v793_v36  ;;  %v865_v56 = vrot.slane %v857_v46, 4 }
  0x83   : > { %780 = vst [vmem:[%s2021_s27 + $0x20] sm:$0xff] %v2076_v16  ;;  %v733_v22 = vsub.f32 1.0, %v732_v17  ;;  %v648_v24 = vrot.slane %v647_v18, 1  ;;  %1490 = vpow2.f32 %v606_v19  ;;  %vm2080_vm6 = vmor %vm736_vm4, %vm737_vm5  ;;  %v872_v57 = vadd.f32 %v871_v48, %v858_v38  ;;  %v1364_v19 = vld [vmem:[%s2086_s26 + $0xc0] sm:$0xff]  ;;  %v786_v48 = vld [vmem:[%s2086_s26 + $0x10] sm:$0xff] }
  0x84   : > { %v801_v62 = vadd.f32 %v800_v14, %v792_v43  ;;  %v808_v4 = vrot.slane %v807_v53, 2  ;;  %v866_v61 = vadd.f32 %v865_v56, %v857_v46  ;;  %v930_v6 = vrot.slane %v922_v51, 4 }
  0x85   : > { %v734_v25 = vmul.f32 %v1489_v15, %v733_v22  ;;  %v649_v26 = vadd.f32 %v648_v24, %v647_v18  ;;  %v873_v5 = vrot.slane %v872_v57, 2  ;;  %v936_v10 = vrot.slane %v923_v52, 4 }
  0x86   : > { %v802_v54 = vrot.slane %v801_v62, 2  ;;  %v809_v11 = vadd.f32 %v808_v4, %v807_v53  ;;  %v867_v63 = vrot.slane %v866_v61, 2  ;;  %v931_v12 = vadd.f32 %v930_v6, %v922_v51  ;;  %v1350_v53 = vld [vmem:[%s2086_s26 + $0x50] sm:$0xff] }
  0x87   : > { %v735_v29 = vadd.f32 %v1489_v15, %v734_v25  ;;  %1492 = vrcp.f32 %v649_v26  ;;  %v755_v31 = vand.u32 2147483647, %v649_v26  ;;  %v757_v34 = vand.u32 2147483648, %v649_v26  ;;  %v1358_v6 = vld [vmem:[%s2086_s26 + $0x90] sm:$0xff] }
  0x88   : > { %vm751_vm8 = vweird.f32 %v649_v26  ;;  %v874_v59 = vadd.f32 %v873_v5, %v872_v57  ;;  %v803_v17 = vadd.f32 %v802_v54, %v801_v62  ;;  %v937_v18 = vadd.f32 %v936_v10, %v923_v52  ;;  %v1351_v62 = vld [vmem:[%s2086_s26 + $0x58] sm:$0xff] }
  0x89   : > { %v2090_v21 = vpop.eup %1490  ;;  %v739_v37 = vsel %vm2080_vm6, %v1489_v15, %v735_v29  ;;  %vm2106_vm9 = vcmp.eq.f32.partialorder %v755_v31, 8.507059e+37  ;;  %v810_v20 = vrot.slane %v809_v11, 1  ;;  %v868_v22 = vadd.f32 %v867_v63, %v866_v61 }
  0x8a   : > { %v744_v39 = vsel %vm741_vm7, %v743_v28, %v739_v37  ;;  %v650_v41 = vrot.slane %v2090_v21, 4  ;;  %v875_v24 = vrot.slane %v874_v59, 1  ;;  %v932_v25 = vrot.slane %v931_v12, 2 }
  0x8b   : > { %v2103_v45 = vmul.f32 %v1973_v2, %v744_v39  ;;  %v758_v2 = vor.u32 1.1754944e-38, %v757_v34  ;;  %v804_v29 = vrot.slane %v803_v17, 1  ;;  %v938_v31 = vrot.slane %v937_v18, 2 }
  0x8c   : > { %v651_v50 = vadd.f32 %v2090_v21, %v650_v41  ;;  %v811_v32 = vadd.f32 %v810_v20, %v809_v11  ;;  %v869_v33 = vrot.slane %v868_v22, 1  ;;  %v933_v37 = vadd.f32 %v932_v25, %v931_v12 }
  0x8d   : > { %v1493_v40 = vpop.eup %1492  ;;  %781 = vst [vmem:[%s2021_s27 + $0x28] sm:$0xff] %v2103_v45  ;;  %v987_v34 = vmul.f32 %v1364_v19, %v2013_v27  ;;  %v876_v36 = vadd.f32 %v875_v24, %v874_v59  ;;  %v805_v39 = vadd.f32 %v804_v29, %v803_v17  ;;  %v939_v44 = vadd.f32 %v938_v31, %v937_v18 }
  0x8e   : > { %v747_v58 = vmul.f32 %v1493_v40, %v649_v26  ;;  %vm752_vm10 = vweird.f32 %v1493_v40  ;;  %v652_v60 = vrot.slane %v651_v50, 2  ;;  %v870_v41 = vadd.f32 %v869_v33, %v868_v22 }
  0x8f   : > { %vm2118_vm11 = vmor %vm751_vm8, %vm752_vm10  ;;  %v934_v43 = vrot.slane %v933_v37, 1  ;;  %v988_v47 = vmul.f32 %v1365_v42, %v2018_v1  ;;  %v995_v46 = vrot.slane %v987_v34, 4  ;;  %vm1043_vm13 = vcmask 1040384  }
  0x90   : > { %v748_v7 = vsub.f32 1.0, %v747_v58  ;;  %v653_v8 = vadd.f32 %v652_v60, %v651_v50  ;;  %v940_v14 = vrot.slane %v939_v44, 1  ;;  %v1045_v1 = vsel %vm1043_vm13, %v811_v32, %v876_v36 }
  0x91   : > { %v935_v50 = vadd.f32 %v934_v43, %v933_v37  ;;  %v996_v52 = vadd.f32 %v995_v46, %v987_v34  ;;  %vm1052_vm15 = vcmask 1041408   ;;  %vm1061_vm0 = vcmask 1042432  }
  0x92   : > { %v749_v3 = vmul.f32 %v1493_v40, %v748_v7  ;;  %v654_v15 = vrot.slane %v653_v8, 1  ;;  %v941_v57 = vadd.f32 %v940_v14, %v939_v44  ;;  %v794_v60 = vmul.f32 %v786_v48, %v2051_v55  ;;  %v1366_v48 = vld [vmem:[%s2086_s26 + $0xd0] sm:$0xff] }
  0x93   : > { %v997_v61 = vrot.slane %v996_v52, 2  ;;  %v859_v10 = vmul.f32 %v1350_v53, %v2051_v55  ;;  %vm1082_vm2 = vcmask 1043456   ;;  %v860_v12 = vmul.f32 %v1351_v62, %v2069_v9 }
  0x94   : > { %v750_v23 = vadd.f32 %v1493_v40, %v749_v3  ;;  %v2122_v28 = vadd.f32 %v654_v15, %v653_v8  ;;  %v1054_v7 = vsel %vm1052_vm15, %v1045_v1, %v941_v57  ;;  %v812_v54 = vrot.slane %v794_v60, 4  ;;  %v1359_v3 = vld [vmem:[%s2086_s26 + $0x98] sm:$0xff] }
  0x95   : > { %v998_v63 = vadd.f32 %v997_v61, %v996_v52  ;;  %v877_v18 = vrot.slane %v859_v10, 4  ;;  %v924_v19 = vmul.f32 %v1358_v6, %v2051_v55  ;;  %v883_v24 = vrot.slane %v860_v12, 4 }
  0x96   : > { %v754_v26 = vsel %vm2118_vm11, %v1493_v40, %v750_v23  ;;  %1494 = vrcp.f32 %v2122_v28  ;;  %v770_v35 = vand.u32 2147483647, %v2122_v28  ;;  %v772_v30 = vand.u32 2147483648, %v2122_v28 }
  0x97   : > { %v759_v38 = vsel %vm2106_vm9, %v758_v2, %v754_v26  ;;  %vm766_vm12 = vweird.f32 %v2122_v28  ;;  %v1001_v40 = vrot.slane %v988_v47, 4  ;;  %v787_v2 = vld [vmem:[%s2086_s26 + $0x18] sm:$0xff]  ;;  %v813_v15 = vadd.f32 %v812_v54, %v794_v60  ;;  %v789_v60 = vld [vmem:[%s2086_s26 + $0x28] sm:$0xff] }
  0x98   : > { %v2134_v27 = vmul.f32 %v2059_v0, %v759_v38  ;;  %v773_v49 = vor.u32 1.1754944e-38, %v772_v30  ;;  %v1044_v0 = vsel %vm1043_vm13, %v805_v39, %v870_v41  ;;  %vm2142_vm14 = vcmp.eq.f32.partialorder %v770_v35, 8.507059e+37 }
  0x99   : > { %v1053_v58 = vsel %vm1052_vm15, %v1044_v0, %v935_v50  ;;  %v1002_v5 = vadd.f32 %v1001_v40, %v988_v47  ;;  %v795_v8 = vmul.f32 %v787_v2, %v2069_v9  ;;  %v999_v20 = vrot.slane %v998_v63, 1  ;;  %v1367_v40 = vld [vmem:[%s2086_s26 + $0xd8] sm:$0xff] }
  0x9a   : > { %782 = vst [vmem:[%s2021_s27 + $0x30] sm:$0xff] %v2134_v27  ;;  %v814_v23 = vrot.slane %v813_v15, 2  ;;  %v878_v31 = vadd.f32 %v877_v18, %v859_v10  ;;  %v925_v32 = vmul.f32 %v1359_v3, %v2069_v9  ;;  %v884_v26 = vadd.f32 %v883_v24, %v860_v12 }
  0x9b   : > { %v1003_v59 = vrot.slane %v1002_v5, 2  ;;  %v818_v17 = vrot.slane %v795_v8, 4  ;;  %v1000_v37 = vadd.f32 %v999_v20, %v998_v63  ;;  %v942_v38 = vrot.slane %v924_v19, 4 }
  0x9c   : > { %v1495_v56 = vpop.eup %1494  ;;  %v815_v35 = vadd.f32 %v814_v23, %v813_v15  ;;  %v879_v42 = vrot.slane %v878_v31, 2  ;;  %v885_v41 = vrot.slane %v884_v26, 2  ;;  %v989_v57 = vmul.f32 %v1366_v48, %v2051_v55 }
  0x9d   : > { %v762_v4 = vmul.f32 %v1495_v56, %v2122_v28  ;;  %vm767_vm1 = vweird.f32 %v1495_v56  ;;  %v1004_v22 = vadd.f32 %v1003_v59, %v1002_v5  ;;  %v819_v29 = vadd.f32 %v818_v17, %v795_v8 }
  0x9e   : > { %vm2169_vm3 = vmor %vm766_vm12, %vm767_vm1  ;;  %v1062_v39 = vsel %vm1061_vm0, %v1053_v58, %v1000_v37  ;;  %v816_v44 = vrot.slane %v815_v35, 1  ;;  %v880_v46 = vadd.f32 %v879_v42, %v878_v31  ;;  %v886_v0 = vadd.f32 %v885_v41, %v884_v26  ;;  %v788_v58 = vld [vmem:[%s2086_s26 + $0x20] sm:$0xff] }
  0x9f   : > { %v763_v11 = vsub.f32 1.0, %v762_v4  ;;  %v1005_v34 = vrot.slane %v1004_v22, 1  ;;  %v820_v36 = vrot.slane %v819_v29, 2  ;;  %v943_v52 = vadd.f32 %v942_v38, %v924_v19 }
  0xa0   : > { %v817_v51 = vadd.f32 %v816_v44, %v815_v35  ;;  %v881_v2 = vrot.slane %v880_v46, 1  ;;  %v990_v5 = vmul.f32 %v1367_v40, %v2069_v9 }
  0xa1   : > { %v764_v13 = vmul.f32 %v1495_v56, %v763_v11  ;;  %v1006_v30 = vadd.f32 %v1005_v34, %v1004_v22  ;;  %v821_v47 = vadd.f32 %v820_v36, %v819_v29  ;;  %v944_v53 = vrot.slane %v943_v52, 2 }
  0xa2   : > { %v882_v61 = vadd.f32 %v881_v2, %v880_v46 }
  0xa3   : > { %v765_v33 = vadd.f32 %v1495_v56, %v764_v13  ;;  %v1063_v14 = vsel %vm1061_vm0, %v1054_v7, %v1006_v30  ;;  %v822_v1 = vrot.slane %v821_v47, 1 }
  0xa5   : > { %v769_v28 = vsel %vm2169_vm3, %v1495_v56, %v765_v33  ;;  %v948_v56 = vrot.slane %v925_v32, 4  ;;  %v823_v4 = vadd.f32 %v822_v1, %v821_v47 }
  0xa6   : > { %v774_v43 = vsel %vm2142_vm14, %v773_v49, %v769_v28  ;;  %v1078_v49 = vrot.slane %v1063_v14, 4 }
  0xa7   : > { %v2183_v50 = vmul.f32 %v2090_v21, %v774_v43  ;;  %v887_v21 = vrot.slane %v886_v0, 1 }
  0xa8   : > { %v1083_v62 = vsel %vm1082_vm2, %v1062_v39, %v1078_v49 }
  0xa9   : > { %783 = vst [vmem:[%s2021_s27 + $0x38] sm:$0xff] %v2183_v50 }
  0xaa   : > { %1613 = shalt.err (!%p1610_p13)
}
  0xab   : > { %1392 = dma.vmem_to_hbm [thread:$0]  (%p1788_p9), %s2187_s14, 1024, %s2189_s13, %s1101_s22   ;;  %v888_v55 = vadd.f32 %v887_v21, %v886_v0  ;;  %v945_v9 = vadd.f32 %v944_v53, %v943_v52  ;;  %v949_v6 = vadd.f32 %v948_v56, %v925_v32  ;;  %v1007_v7 = vrot.slane %v989_v57, 4  ;;  %v1352_v8 = vld [vmem:[%s2086_s26 + $0x60] sm:$0xff]  ;;  %v1353_v59 = vld [vmem:[%s2086_s26 + $0x68] sm:$0xff] }
  0xac   : > { %s2214_s24 = scalar_lea.vmem [#allocation8], %s1319_s1  ;;  %v1013_v54 = vrot.slane %v990_v5, 4  ;;  %v1046_v10 = vsel %vm1043_vm13, %v817_v51, %v882_v61  ;;  %v796_v11 = vmul.f32 %v788_v58, %v2076_v16  ;;  %v797_v63 = vmul.f32 %v789_v60, %v2103_v45  ;;  %v1360_v37 = vld [vmem:[%s2086_s26 + $0xa0] sm:$0xff]  ;;  %v1361_v39 = vld [vmem:[%s2086_s26 + $0xa8] sm:$0xff]  ;;  %v790_v61 = vld [vmem:[%s2086_s26 + $0x30] sm:$0xff]  ;;  %s1383_s1 = sshll.u32 %s1696_s18, 5 }
  0xad   : > { %1091 = vst [vmem:[%s2214_s24] sm:$0xff] %v1083_v62  ;;  %v946_v12 = vrot.slane %v945_v9, 1  ;;  %v950_v3 = vrot.slane %v949_v6, 2  ;;  %v1008_v15 = vadd.f32 %v1007_v7, %v989_v57  ;;  %v1047_v17 = vsel %vm1043_vm13, %v823_v4, %v888_v55  ;;  %v1368_v62 = vld [vmem:[%s2086_s26 + $0xe0] sm:$0xff]  ;;  %v1369_v4 = vld [vmem:[%s2086_s26 + $0xe8] sm:$0xff]  ;;  %s1114_s27 = scalar_lea.hbm %s2313_s3, %s1383_s1  ;;  %s1096_s10 = scalar_lea.sflag [#allocation4], %s1834_s7 }
  0xae   : > { %v1014_v18 = vadd.f32 %v1013_v54, %v990_v5  ;;  %v824_v19 = vrot.slane %v796_v11, 4  ;;  %v830_v13 = vrot.slane %v797_v63, 4  ;;  %v861_v20 = vmul.f32 %v1352_v8, %v2076_v16  ;;  %s1118_s18 = sshll.u32 %s1114_s27, 4  ;;  %s1634_s13 = scalar_lea.hbm %s2313_s3, 64  ;;  %s1119_s18 = int_to_ptr.hbm [resolvable:$true] %s1118_s18 }
  0xaf   : > { %v947_v22 = vadd.f32 %v946_v12, %v945_v9  ;;  %v951_v24 = vadd.f32 %v950_v3, %v949_v6  ;;  %v1009_v25 = vrot.slane %v1008_v15, 2  ;;  %v862_v23 = vmul.f32 %v1353_v59, %v2103_v45  ;;  %s1628_s11 = sshra.s32 %s1119_s18, 4  ;;  %s1629_s11 = int_to_ptr.hbm [resolvable:$true] %s1628_s11 }
  0xb0   : > { %v1015_v29 = vrot.slane %v1014_v18, 2  ;;  %v825_v31 = vadd.f32 %v824_v19, %v796_v11  ;;  %v831_v32 = vadd.f32 %v830_v13, %v797_v63  ;;  %v889_v33 = vrot.slane %v861_v20, 4  ;;  %v791_v11 = vld [vmem:[%s2086_s26 + $0x38] sm:$0xff]  ;;  %v1354_v13 = vld [vmem:[%s2086_s26 + $0x70] sm:$0xff]  ;;  %s1630_s12 = scalar_lea.hbm %s1629_s11, 32  ;;  %p1635_p3 = scmp.lt.s32.totalorder %s1629_s11, %s2313_s3 }
  0xb1   : > { %v952_v34 = vrot.slane %v951_v24, 1  ;;  %v1010_v26 = vadd.f32 %v1009_v25, %v1008_v15  ;;  %v1055_v35 = vsel %vm1052_vm15, %v1046_v10, %v947_v22  ;;  %v895_v36 = vrot.slane %v862_v23, 4  ;;  %p1631_p0 = scmp.ne.s32.totalorder %s1629_s11, %s1630_s12  ;;  %p1636_p4 = scmp.lt.s32.totalorder %s1634_s13, %s1630_s12 }
  0xb2   : > { %v1016_v42 = vadd.f32 %v1015_v29, %v1014_v18  ;;  %v826_v38 = vrot.slane %v825_v31, 2  ;;  %v832_v28 = vrot.slane %v831_v32, 2  ;;  %v890_v30 = vadd.f32 %v889_v33, %v861_v20 }
  0xb3   : > { %v953_v41 = vadd.f32 %v952_v34, %v951_v24  ;;  %v1011_v43 = vrot.slane %v1010_v26, 1  ;;  %v896_v44 = vadd.f32 %v895_v36, %v862_v23  ;;  %v926_v47 = vmul.f32 %v1360_v37, %v2076_v16  ;;  %v1355_v23 = vld [vmem:[%s2086_s26 + $0x78] sm:$0xff]  ;;  %p1632_p1 = pnand %p1631_p0, %p1788_p9  ;;  %p1637_p5 = por %p1636_p4, %p1635_p3 }
  0xb4   : > { %v1017_v46 = vrot.slane %v1016_v42, 1  ;;  %v827_v48 = vadd.f32 %v826_v38, %v825_v31  ;;  %v833_v14 = vadd.f32 %v832_v28, %v831_v32  ;;  %v891_v0 = vrot.slane %v890_v30, 2 }
  0xb5   : > { %v1012_v52 = vadd.f32 %v1011_v43, %v1010_v26  ;;  %v1056_v40 = vsel %vm1052_vm15, %v1047_v17, %v953_v41  ;;  %v897_v49 = vrot.slane %v896_v44, 2  ;;  %v927_v51 = vmul.f32 %v1361_v39, %v2103_v45  ;;  %p1633_p2 = pneg %p1632_p1 }
  0xb6   : > { %v1018_v1 = vadd.f32 %v1017_v46, %v1016_v42  ;;  %v828_v2 = vrot.slane %v827_v48, 1  ;;  %v834_v21 = vrot.slane %v833_v14, 1  ;;  %v892_v53 = vadd.f32 %v891_v0, %v890_v30 }
  0xb7   : > { %v1064_v56 = vsel %vm1061_vm0, %v1055_v35, %v1012_v52  ;;  %v898_v57 = vadd.f32 %v897_v49, %v896_v44  ;;  %v954_v58 = vrot.slane %v926_v47, 4  ;;  %v960_v60 = vrot.slane %v927_v51, 4  ;;  %v1362_v52 = vld [vmem:[%s2086_s26 + $0xb0] sm:$0xff]  ;;  %p1638_p6 = pnand %p1637_p5, %p1633_p2 }
  0xb8   : > { %v1065_v5 = vsel %vm1061_vm0, %v1056_v40, %v1018_v1  ;;  %v829_v55 = vadd.f32 %v828_v2, %v827_v48  ;;  %v835_v9 = vadd.f32 %v834_v21, %v833_v14  ;;  %v893_v6 = vrot.slane %v892_v53, 1  ;;  %v1363_v40 = vld [vmem:[%s2086_s26 + $0xb8] sm:$0xff] }
  0xb9   : > { %v1079_v7 = vrot.slane %v1065_v5, 4  ;;  %v899_v8 = vrot.slane %v898_v57, 1  ;;  %v955_v54 = vadd.f32 %v954_v58, %v926_v47  ;;  %v961_v10 = vadd.f32 %v960_v60, %v927_v51 }
  0xba   : > { %v894_v63 = vadd.f32 %v893_v6, %v892_v53  ;;  %v991_v59 = vmul.f32 %v1368_v62, %v2076_v16  ;;  %v992_v12 = vmul.f32 %v1369_v4, %v2103_v45  ;;  %v798_v3 = vmul.f32 %v790_v61, %v2134_v27 }
  0xbb   : > { %v1084_v15 = vsel %vm1082_vm2, %v1064_v56, %v1079_v7  ;;  %v900_v17 = vadd.f32 %v899_v8, %v898_v57  ;;  %v956_v18 = vrot.slane %v955_v54, 2  ;;  %v962_v19 = vrot.slane %v961_v10, 2  ;;  %v1370_v7 = vld [vmem:[%s2086_s26 + $0xf0] sm:$0xff]  ;;  %v1371_v8 = vld [vmem:[%s2086_s26 + $0xf8] sm:$0xff]  ;;  %s1116_s26 = sshll.u32 %s2214_s24, 4  ;;  %s1117_s26 = int_to_ptr.vmem [resolvable:$true] %s1116_s26 }
  0xbc   : > { %1092 = vst [vmem:[%s2214_s24 + $0x8] sm:$0xff] %v1084_v15  ;;  %v1019_v20 = vrot.slane %v991_v59, 4  ;;  %v1025_v22 = vrot.slane %v992_v12, 4  ;;  %v1048_v24 = vsel %vm1043_vm13, %v829_v55, %v894_v63  ;;  %v799_v25 = vmul.f32 %v791_v11, %v2183_v50 }
  0xbd   : > { %v957_v29 = vadd.f32 %v956_v18, %v955_v54  ;;  %v963_v16 = vadd.f32 %v962_v19, %v961_v10  ;;  %v1049_v45 = vsel %vm1043_vm13, %v835_v9, %v900_v17  ;;  %v836_v31 = vrot.slane %v798_v3, 4 }
  0xbe   : > { %v1020_v32 = vadd.f32 %v1019_v20, %v991_v59  ;;  %v1026_v33 = vadd.f32 %v1025_v22, %v992_v12  ;;  %v842_v37 = vrot.slane %v799_v25, 4  ;;  %v863_v34 = vmul.f32 %v1354_v13, %v2134_v27 }
  0xbf   : > { %v958_v26 = vrot.slane %v957_v29, 1  ;;  %v964_v35 = vrot.slane %v963_v16, 1  ;;  %v837_v36 = vadd.f32 %v836_v31, %v798_v3  ;;  %v864_v42 = vmul.f32 %v1355_v23, %v2183_v50 }
  0xc0   : > { %v1021_v38 = vrot.slane %v1020_v32, 2  ;;  %v1027_v28 = vrot.slane %v1026_v33, 2  ;;  %v843_v30 = vadd.f32 %v842_v37, %v799_v25  ;;  %v901_v39 = vrot.slane %v863_v34, 4 }
  0xc1   : > { %v959_v41 = vadd.f32 %v958_v26, %v957_v29  ;;  %v965_v43 = vadd.f32 %v964_v35, %v963_v16  ;;  %v838_v44 = vrot.slane %v837_v36, 2  ;;  %v907_v47 = vrot.slane %v864_v42, 4 }
  0xc2   : > { %v1022_v46 = vadd.f32 %v1021_v38, %v1020_v32  ;;  %v1028_v48 = vadd.f32 %v1027_v28, %v1026_v33  ;;  %v844_v14 = vrot.slane %v843_v30, 2  ;;  %v902_v0 = vadd.f32 %v901_v39, %v863_v34 }
  0xc3   : > { %v1057_v49 = vsel %vm1052_vm15, %v1048_v24, %v959_v41  ;;  %v1058_v51 = vsel %vm1052_vm15, %v1049_v45, %v965_v43  ;;  %v908_v1 = vadd.f32 %v907_v47, %v864_v42  ;;  %v839_v53 = vadd.f32 %v838_v44, %v837_v36 }
  0xc4   : > { %v1023_v2 = vrot.slane %v1022_v46, 1  ;;  %v1029_v21 = vrot.slane %v1028_v48, 1  ;;  %v903_v56 = vrot.slane %v902_v0, 2  ;;  %v845_v57 = vadd.f32 %v844_v14, %v843_v30 }
  0xc5   : > { %v909_v58 = vrot.slane %v908_v1, 2  ;;  %v928_v60 = vmul.f32 %v1362_v52, %v2134_v27  ;;  %v929_v62 = vmul.f32 %v1363_v40, %v2183_v50  ;;  %v840_v11 = vrot.slane %v839_v53, 1 }
  0xc6   : > { %v1024_v4 = vadd.f32 %v1023_v2, %v1022_v46  ;;  %v1030_v61 = vadd.f32 %v1029_v21, %v1028_v48  ;;  %v904_v5 = vadd.f32 %v903_v56, %v902_v0  ;;  %v846_v59 = vrot.slane %v845_v57, 1 }
  0xc7   : > { %v910_v55 = vadd.f32 %v909_v58, %v908_v1  ;;  %v966_v9 = vrot.slane %v928_v60, 4  ;;  %v972_v6 = vrot.slane %v929_v62, 4  ;;  %v993_v18 = vmul.f32 %v1370_v7, %v2134_v27 }
  0xc8   : > { %v1066_v54 = vsel %vm1061_vm0, %v1057_v49, %v1024_v4  ;;  %v1067_v10 = vsel %vm1061_vm0, %v1058_v51, %v1030_v61  ;;  %v905_v15 = vrot.slane %v904_v5, 1  ;;  %v994_v19 = vmul.f32 %v1371_v8, %v2183_v50 }
  0xc9   : > { %v1080_v63 = vrot.slane %v1067_v10, 4  ;;  %v967_v12 = vadd.f32 %v966_v9, %v928_v60  ;;  %v973_v3 = vadd.f32 %v972_v6, %v929_v62  ;;  %v911_v17 = vrot.slane %v910_v55, 1 }
  0xca   : > { %v1031_v24 = vrot.slane %v993_v18, 4  ;;  %v1037_v25 = vrot.slane %v994_v19, 4  ;;  %v841_v23 = vadd.f32 %v840_v11, %v839_v53  ;;  %v847_v29 = vadd.f32 %v846_v59, %v845_v57 }
  0xcb   : > { %v1085_v13 = vsel %vm1082_vm2, %v1066_v54, %v1080_v63  ;;  %v968_v20 = vrot.slane %v967_v12, 2  ;;  %v974_v22 = vrot.slane %v973_v3, 2  ;;  %v906_v31 = vadd.f32 %v905_v15, %v904_v5 }
  0xcc   : > { %1093 = vst [vmem:[%s2214_s24 + $0x10] sm:$0xff] %v1085_v13  ;;  %v912_v32 = vadd.f32 %v911_v17, %v910_v55  ;;  %v1032_v33 = vadd.f32 %v1031_v24, %v993_v18  ;;  %v1038_v37 = vadd.f32 %v1037_v25, %v994_v19 }
  0xcd   : > { %v969_v16 = vadd.f32 %v968_v20, %v967_v12  ;;  %v975_v45 = vadd.f32 %v974_v22, %v973_v3  ;;  %v1050_v28 = vsel %vm1043_vm13, %v841_v23, %v906_v31 }
  0xce   : > { %v1033_v50 = vrot.slane %v1032_v33, 2  ;;  %v1039_v26 = vrot.slane %v1038_v37, 2  ;;  %v1051_v30 = vsel %vm1043_vm13, %v847_v29, %v912_v32 }
  0xcf   : > { %v970_v34 = vrot.slane %v969_v16, 1  ;;  %v976_v27 = vrot.slane %v975_v45, 1 }
  0xd0   : > { %v1034_v42 = vadd.f32 %v1033_v50, %v1032_v33  ;;  %v1040_v38 = vadd.f32 %v1039_v26, %v1038_v37 }
  0xd1   : > { %v971_v35 = vadd.f32 %v970_v34, %v969_v16  ;;  %v977_v36 = vadd.f32 %v976_v27, %v975_v45 }
  0xd2   : > { %v1035_v39 = vrot.slane %v1034_v42, 1  ;;  %v1041_v41 = vrot.slane %v1040_v38, 1 }
  0xd3   : > { %v1059_v43 = vsel %vm1052_vm15, %v1050_v28, %v971_v35  ;;  %v1060_v44 = vsel %vm1052_vm15, %v1051_v30, %v977_v36 }
  0xd4   : > { %v1036_v47 = vadd.f32 %v1035_v39, %v1034_v42  ;;  %v1042_v46 = vadd.f32 %v1041_v41, %v1040_v38 }
  0xd6   : > { %v1068_v48 = vsel %vm1061_vm0, %v1059_v43, %v1036_v47  ;;  %v1069_v14 = vsel %vm1061_vm0, %v1060_v44, %v1042_v46 }
  0xd7   : > { %v1081_v0 = vrot.slane %v1069_v14, 4 }
  0xd9   : > { %v1086_v52 = vsel %vm1082_vm2, %v1068_v48, %v1081_v0 }
  0xda   : > { %1094 = vst [vmem:[%s2214_s24 + $0x18] sm:$0xff] %v1086_v52 }
  0xdb   : > { %1641 = shalt.err (!%p1638_p6)
}
  0xdc   : > { %1391 = dma.vmem_to_hbm [thread:$0]  (%p1788_p9), %s1117_s26, 512, %s1119_s18, %s1096_s10  }
  0xdd PF: > { %s1147_s29 = sand.u32 1, %s1684_s15   ;;  %p1406_p7 = pnand %p1308_p12, %p1795_p11 }
  0xde   : > { %s1148_s17 = scalar_lea.sflag [#allocation4], %s1147_s29 }
  0xdf   : > { %p1407_p8 = pneg %p1406_p7 }
  0xe1   : > { %1675 = dma.done.wait (%p1407_p8), %s1148_s17, 512  }
  0xe2   : > { %1677 = vsyncadd (%p1407_p8), %s1148_s17, 4294966784  ;;  %s1158_s30 = scalar_lea.sflag [#allocation10], %s1147_s29 }
  0xe3   : > { %1679 = dma.done.wait (%p1407_p8), %s1158_s30, 1024  }
  0xe4   : > { %1681 = vsyncadd (%p1407_p8), %s1158_s30, 4294966272  ;;  %s27_s20 = sadd.s32 1, %s1704_s20   ;;  %s2354_s28 = sld [smem:[#allocation15_spill]] }
  0xe5   : > { %p24_p10 = scmp.ge.s32.totalorder %s27_s20, 4   ;;  %s2355_s17 = sld [smem:[#allocation17_spill]] }
  0xe6   : > { %s2356_s9 = sld [smem:[#allocation16_spill]]  ;;  %s2357_s15 = smov %s1688_s16 }
  0xe7   : > { %s2359_s18 = smov %s1700_s19 }
  0xe8   :  { %26 = sbr.rel (!%p24_p10) target bundleno = 12 (0xc), region = 124 }
  0xea   : > { %s2358_s16 = smov %s2354_s28 }
  0xec   : > { %s2360_s19 = smov %s2356_s9 }
  0xed   :  { %1164 = vsyncpa [#allocation3], 1 }
  0xee   :  { %1166 = vsyncpa [#allocation3 + $0x1], 1 }
  0xef   :  { %1167 = vsyncpa [#allocation6], 1 }
  0xf0   :  { %1169 = vsyncpa [#allocation6 + $0x1], 1 }
  0xf1   :  { %1170 = vsyncpa [#allocation4], 1 }
  0xf2   :  { %1172 = vsyncpa [#allocation4 + $0x1], 1 }
  0xf3   :  { %1173 = vsyncpa [#allocation10], 1 }
  0xf4   :  { %1175 = vsyncpa [#allocation10 + $0x1], 1 }

</bundles_post_ra>
